<compile_context>
chip_gen: v5e
topology: v5e:2x2
jax: 0.10.0
libtpu: 0.0.40
codegen_flags: <defaults>
</compile_context>

<pallas_src>
import jax
import jax.numpy as jnp
from jax.experimental import pallas as pl
from jax.experimental.pallas import tpu as pltpu

LEAKY_SLOPE = 0.01  # PyTorch nn.LeakyReLU default negative_slope


def _leaky_relu(x):
    return jnp.where(x > 0, x, LEAKY_SLOPE * x)


def _critic_kernel(x_ref,
                   w1_ref, b1_ref,
                   w2_ref, b2_ref,
                   w3_ref, b3_ref,
                   wo_ref, bo_ref,
                   o_ref):
    """Feature-major critic forward for one batch tile.

    Shapes (tb = batch tile, batch on the lane axis):
      x_ref : (D_in, tb) bf16      w*_ref : (H, *)  bf16
      b*_ref: (H, 1)     f32       wo_ref : (H, 1)  f32
      bo_ref: (1,)       f32 SMEM  o_ref  : (1, tb) f32
    """
    # Hidden layer 1: bf16 operands -> MXU, f32 accumulation; f32 VPU epilogue.
    h = jnp.dot(w1_ref[...], x_ref[...], preferred_element_type=jnp.float32)
    h = _leaky_relu(h + b1_ref[...])
    # TODO(synk): Dropout(p=0.001) is identity here (eval/inference semantics).

    # Hidden layer 2
    h = jnp.dot(w2_ref[...], h.astype(jnp.bfloat16),
                preferred_element_type=jnp.float32)
    h = _leaky_relu(h + b2_ref[...])

    # Hidden layer 3
    h = jnp.dot(w3_ref[...], h.astype(jnp.bfloat16),
                preferred_element_type=jnp.float32)
    h = _leaky_relu(h + b3_ref[...])

    # Output layer Linear(H -> 1): broadcast-multiply + sublane (XLU) reduce.
    # Result is already a lane-dense (1, tb) row -> unmasked full-lane store.
    out = jnp.sum(h * wo_ref[...], axis=0, keepdims=True)          # (1, tb) f32
    o_ref[...] = (out + bo_ref[0]).astype(o_ref.dtype)


def _choose_tiling(batch, tb_req):
    """Round the batch tile to a multiple of 128; prefer an even >=2-step grid."""
    tb_req = max(128, (tb_req // 128) * 128)
    b_pad = pl.cdiv(batch, 128) * 128
    if b_pad <= tb_req:
        # Whole (padded) batch fits in one requested tile.  Split it in two when
        # possible so the "parallel" grid axis can shard across v7x's 2 TCs.
        if b_pad >= 256 and b_pad % 256 == 0:
            tb = b_pad // 2
        else:
            tb = b_pad
    else:
        tb = tb_req
        b_pad = pl.cdiv(b_pad, tb) * tb
    return tb, b_pad


def discriminator_forward(x, params, *, tb=1024):
    """x: (B, D_in) float array.  params: dict of f32 module weights.  Returns (B,) f32."""
    B, d_in = x.shape
    hidden = params["w1"].shape[1]
    tb, b_pad = _choose_tiling(B, tb)
    num_tiles = b_pad // tb

    # Feature-major operands.  The transpose + bf16 cast of x fuse into one XLA
    # op; in production the producer would emit a (D_in, B) bf16 slab directly
    # and this becomes a no-op.
    x_t = x.T.astype(jnp.bfloat16)                                     # (D_in, B)
    if b_pad != B:
        x_t = jnp.pad(x_t, ((0, 0), (0, b_pad - B)))

    w1_t = params["w1"].T.astype(jnp.bfloat16)                         # (H, D_in)
    w2_t = params["w2"].T.astype(jnp.bfloat16)                         # (H, H)
    w3_t = params["w3"].T.astype(jnp.bfloat16)                         # (H, H)
    b1 = params["b1"].reshape(hidden, 1).astype(jnp.float32)
    b2 = params["b2"].reshape(hidden, 1).astype(jnp.float32)
    b3 = params["b3"].reshape(hidden, 1).astype(jnp.float32)
    wo = params["wo"].reshape(hidden, 1).astype(jnp.float32)
    bo = params["bo"].reshape(1).astype(jnp.float32)                   # SMEM scalar

    def resident(shape):
        # Constant block index -> stays VMEM-resident, never re-DMA'd.
        # (Could also carry pipeline_mode=pl.Buffered(1); the ~6 KB of weights
        #  make the extra default pipeline buffer immaterial.)
        return pl.BlockSpec(shape, lambda i: (0, 0))

    out = pl.pallas_call(
        _critic_kernel,
        grid=(num_tiles,),
        out_shape=jax.ShapeDtypeStruct((1, b_pad), jnp.float32),
        in_specs=[
            pl.BlockSpec((d_in, tb), lambda i: (0, i)),               # x^T: batch on lanes
            resident((hidden, d_in)), resident((hidden, 1)),          # w1^T, b1
            resident((hidden, hidden)), resident((hidden, 1)),        # w2^T, b2
            resident((hidden, hidden)), resident((hidden, 1)),        # w3^T, b3
            resident((hidden, 1)),                                    # wo column (f32)
            pl.BlockSpec(memory_space=pltpu.MemorySpace.SMEM),        # bo scalar
        ],
        out_specs=pl.BlockSpec((1, tb), lambda i: (0, i)),            # lane-dense rows
        compiler_params=pltpu.CompilerParams(
            dimension_semantics=("parallel",)),                       # megacore sharding
    )(x_t, w1_t, b1, w2_t, b2, w3_t, b3, wo, bo)

    return out.reshape(-1)[:B]   # .view(-1) in the PyTorch module


def init_params(key, d_in, hidden):
    """Deterministic synthetic init (stand-in for the module's init_weights)."""
    ks = jax.random.split(key, 8)
    scale = 0.1
    return {
        "w1": scale * jax.random.normal(ks[0], (d_in, hidden), jnp.float32),
        "b1": scale * jax.random.normal(ks[1], (1, hidden), jnp.float32),
        "w2": scale * jax.random.normal(ks[2], (hidden, hidden), jnp.float32),
        "b2": scale * jax.random.normal(ks[3], (1, hidden), jnp.float32),
        "w3": scale * jax.random.normal(ks[4], (hidden, hidden), jnp.float32),
        "b3": scale * jax.random.normal(ks[5], (1, hidden), jnp.float32),
        "wo": scale * jax.random.normal(ks[6], (hidden, 1), jnp.float32),
        "bo": scale * jax.random.normal(ks[7], (1, 1), jnp.float32),
    }


def ref_forward(x, p):
    """Plain-JAX reference with the same bf16-operand / f32-accumulate math."""
    lrelu = lambda v: jnp.where(v > 0, v, LEAKY_SLOPE * v)
    h = jnp.dot(x.astype(jnp.bfloat16), p["w1"].astype(jnp.bfloat16),
                preferred_element_type=jnp.float32)
    h = lrelu(h + p["b1"])
    h = jnp.dot(h.astype(jnp.bfloat16), p["w2"].astype(jnp.bfloat16),
                preferred_element_type=jnp.float32)
    h = lrelu(h + p["b2"])
    h = jnp.dot(h.astype(jnp.bfloat16), p["w3"].astype(jnp.bfloat16),
                preferred_element_type=jnp.float32)
    h = lrelu(h + p["b3"])
    return (jnp.sum(h * p["wo"].reshape(1, -1), axis=-1)
            + p["bo"].reshape(())).astype(jnp.float32)


if __name__ == "__main__":
    key = jax.random.PRNGKey(0)
    k_data, k_cond, k_params = jax.random.split(key, 3)

    # Module-consistent small config:
    #   discriminator_n_units_in=24, discriminator_units_conditional=8 -> D_in=32
    #   3 hidden layers, hidden=32.  B=500 exercises the 128-rounding / padding
    #   path and the auto-tiling picks tb=256 -> a 2-step even "parallel" grid.
    B, n_units_in, n_units_cond, hidden = 500, 24, 8, 32
    d_in = n_units_in + n_units_cond

    data = jax.random.normal(k_data, (B, n_units_in), jnp.float32)
    cond = jax.random.normal(k_cond, (B, n_units_cond), jnp.float32)
    x = jnp.concatenate([data, cond], axis=-1)  # (B, D_in)

    params = init_params(k_params, d_in, hidden)

    out = discriminator_forward(x, params)
    out = jax.block_until_ready(out)

    assert out.shape == (B,), out.shape
    assert out.dtype == jnp.float32, out.dtype

    ref = ref_forward(x, params)
    max_err = float(jnp.max(jnp.abs(out - ref)))
    assert jnp.allclose(out, ref, atol=2e-3, rtol=2e-3), max_err

    print("KERNEL_OK")
</pallas_src>

<mosaic_0001>
module attributes {stable_mosaic.version = 11 : i64} {
  func.func @_critic_kernel(%arg0: i32, %arg1: memref<32x256xbf16, #tpu.memory_space<vmem>>, %arg2: memref<32x32xbf16, #tpu.memory_space<vmem>>, %arg3: memref<32x1xf32, #tpu.memory_space<vmem>>, %arg4: memref<32x32xbf16, #tpu.memory_space<vmem>>, %arg5: memref<32x1xf32, #tpu.memory_space<vmem>>, %arg6: memref<32x32xbf16, #tpu.memory_space<vmem>>, %arg7: memref<32x1xf32, #tpu.memory_space<vmem>>, %arg8: memref<32x1xf32, #tpu.memory_space<vmem>>, %arg9: memref<1xf32, #tpu.memory_space<smem>>, %arg10: memref<1x256xf32, #tpu.memory_space<vmem>>) attributes {dimension_semantics = [#tpu.dimension_semantics<parallel>], iteration_bounds = array<i64: 2>, scalar_prefetch = 0 : i64, scratch_operands = 0 : i64, tpu.core_type = #tpu.core_type<tc>, window_params = [{transform_indices = @transform_0, window_bounds = array<i64: 32, 256>}, {pipeline_mode = #tpu.pipeline_mode<synchronous>, transform_indices = @transform_1, window_bounds = array<i64: 32, 32>}, {pipeline_mode = #tpu.pipeline_mode<synchronous>, transform_indices = @transform_2, window_bounds = array<i64: 32, 1>}, {pipeline_mode = #tpu.pipeline_mode<synchronous>, transform_indices = @transform_3, window_bounds = array<i64: 32, 32>}, {pipeline_mode = #tpu.pipeline_mode<synchronous>, transform_indices = @transform_4, window_bounds = array<i64: 32, 1>}, {pipeline_mode = #tpu.pipeline_mode<synchronous>, transform_indices = @transform_5, window_bounds = array<i64: 32, 32>}, {pipeline_mode = #tpu.pipeline_mode<synchronous>, transform_indices = @transform_6, window_bounds = array<i64: 32, 1>}, {pipeline_mode = #tpu.pipeline_mode<synchronous>, transform_indices = @transform_7, window_bounds = array<i64: 32, 1>}, {transform_indices = @transform_8, window_bounds = array<i64: 1>}, {transform_indices = @transform_9, window_bounds = array<i64: 1, 256>}]} {
    %c0 = arith.constant 0 : index
    %c0_0 = arith.constant 0 : index
    %0 = vector.load %arg2[%c0, %c0_0] : memref<32x32xbf16, #tpu.memory_space<vmem>>, vector<32x32xbf16>
    %c0_1 = arith.constant 0 : index
    %c0_2 = arith.constant 0 : index
    %1 = vector.load %arg1[%c0_1, %c0_2] : memref<32x256xbf16, #tpu.memory_space<vmem>>, vector<32x256xbf16>
    %cst = arith.constant dense<0.000000e+00> : vector<32x256xf32>
    %2 = tpu.matmul %0, %1, %cst {dimension_numbers = #tpu.dot_dimension_numbers<[1], [0], [0], [1], [0, 0, 1, 1], [], []>} : vector<32x32xbf16>, vector<32x256xbf16>, vector<32x256xf32> -> vector<32x256xf32>
    %c0_3 = arith.constant 0 : index
    %c0_4 = arith.constant 0 : index
    %3 = vector.load %arg3[%c0_3, %c0_4] : memref<32x1xf32, #tpu.memory_space<vmem>>, vector<32x1xf32>
    %4 = vector.broadcast %3 : vector<32x1xf32> to vector<32x256xf32>
    %5 = arith.addf %2, %4 : vector<32x256xf32>
    %cst_5 = arith.constant 0.000000e+00 : f32
    %6 = vector.broadcast %cst_5 : f32 to vector<32x256xf32>
    %7 = arith.cmpf ogt, %5, %6 : vector<32x256xf32>
    %cst_6 = arith.constant 0.00999999977 : f32
    %8 = vector.broadcast %cst_6 : f32 to vector<32x256xf32>
    %9 = arith.mulf %8, %5 : vector<32x256xf32>
    %10 = arith.select %7, %5, %9 : vector<32x256xi1>, vector<32x256xf32>
    %c0_7 = arith.constant 0 : index
    %c0_8 = arith.constant 0 : index
    %11 = vector.load %arg4[%c0_7, %c0_8] : memref<32x32xbf16, #tpu.memory_space<vmem>>, vector<32x32xbf16>
    %12 = arith.truncf %10 : vector<32x256xf32> to vector<32x256xbf16>
    %cst_9 = arith.constant dense<0.000000e+00> : vector<32x256xf32>
    %13 = tpu.matmul %11, %12, %cst_9 {dimension_numbers = #tpu.dot_dimension_numbers<[1], [0], [0], [1], [0, 0, 1, 1], [], []>} : vector<32x32xbf16>, vector<32x256xbf16>, vector<32x256xf32> -> vector<32x256xf32>
    %c0_10 = arith.constant 0 : index
    %c0_11 = arith.constant 0 : index
    %14 = vector.load %arg5[%c0_10, %c0_11] : memref<32x1xf32, #tpu.memory_space<vmem>>, vector<32x1xf32>
    %15 = vector.broadcast %14 : vector<32x1xf32> to vector<32x256xf32>
    %16 = arith.addf %13, %15 : vector<32x256xf32>
    %cst_12 = arith.constant 0.000000e+00 : f32
    %17 = vector.broadcast %cst_12 : f32 to vector<32x256xf32>
    %18 = arith.cmpf ogt, %16, %17 : vector<32x256xf32>
    %cst_13 = arith.constant 0.00999999977 : f32
    %19 = vector.broadcast %cst_13 : f32 to vector<32x256xf32>
    %20 = arith.mulf %19, %16 : vector<32x256xf32>
    %21 = arith.select %18, %16, %20 : vector<32x256xi1>, vector<32x256xf32>
    %c0_14 = arith.constant 0 : index
    %c0_15 = arith.constant 0 : index
    %22 = vector.load %arg6[%c0_14, %c0_15] : memref<32x32xbf16, #tpu.memory_space<vmem>>, vector<32x32xbf16>
    %23 = arith.truncf %21 : vector<32x256xf32> to vector<32x256xbf16>
    %cst_16 = arith.constant dense<0.000000e+00> : vector<32x256xf32>
    %24 = tpu.matmul %22, %23, %cst_16 {dimension_numbers = #tpu.dot_dimension_numbers<[1], [0], [0], [1], [0, 0, 1, 1], [], []>} : vector<32x32xbf16>, vector<32x256xbf16>, vector<32x256xf32> -> vector<32x256xf32>
    %c0_17 = arith.constant 0 : index
    %c0_18 = arith.constant 0 : index
    %25 = vector.load %arg7[%c0_17, %c0_18] : memref<32x1xf32, #tpu.memory_space<vmem>>, vector<32x1xf32>
    %26 = vector.broadcast %25 : vector<32x1xf32> to vector<32x256xf32>
    %27 = arith.addf %24, %26 : vector<32x256xf32>
    %cst_19 = arith.constant 0.000000e+00 : f32
    %28 = vector.broadcast %cst_19 : f32 to vector<32x256xf32>
    %29 = arith.cmpf ogt, %27, %28 : vector<32x256xf32>
    %cst_20 = arith.constant 0.00999999977 : f32
    %30 = vector.broadcast %cst_20 : f32 to vector<32x256xf32>
    %31 = arith.mulf %30, %27 : vector<32x256xf32>
    %32 = arith.select %29, %27, %31 : vector<32x256xi1>, vector<32x256xf32>
    %c0_21 = arith.constant 0 : index
    %c0_22 = arith.constant 0 : index
    %33 = vector.load %arg8[%c0_21, %c0_22] : memref<32x1xf32, #tpu.memory_space<vmem>>, vector<32x1xf32>
    %34 = vector.broadcast %33 : vector<32x1xf32> to vector<32x256xf32>
    %35 = arith.mulf %32, %34 : vector<32x256xf32>
    %cst_23 = arith.constant dense<0.000000e+00> : vector<256xf32>
    %36 = vector.multi_reduction <add>, %35, %cst_23 [0] : vector<32x256xf32> to vector<256xf32>
    %37 = vector.shape_cast %36 : vector<256xf32> to vector<1x256xf32>
    %c0_24 = arith.constant 0 : index
    %38 = memref.load %arg9[%c0_24] : memref<1xf32, #tpu.memory_space<smem>>
    %39 = vector.broadcast %38 : f32 to vector<1x256xf32>
    %40 = arith.addf %37, %39 : vector<1x256xf32>
    %c0_25 = arith.constant 0 : index
    %c0_26 = arith.constant 0 : index
    %41 = vector.load %arg10[%c0_25, %c0_26] : memref<1x256xf32, #tpu.memory_space<vmem>>, vector<1x256xf32>
    tpu.vector_store %arg10[%c0_25, %c0_26], %40 {strides = array<i32>} : memref<1x256xf32, #tpu.memory_space<vmem>>, vector<1x256xf32>,
    return
  }
  func.func @transform_0(%arg0: i32) -> (i32, i32) {
    %c0_i32 = arith.constant 0 : i32
    %c0_i32_0 = arith.constant 0 : i32
    return %c0_i32, %arg0 : i32, i32
  }
  func.func @transform_1(%arg0: i32) -> (i32, i32) {
    %c0_i32 = arith.constant 0 : i32
    %c0_i32_0 = arith.constant 0 : i32
    %c0_i32_1 = arith.constant 0 : i32
    return %c0_i32, %c0_i32_0 : i32, i32
  }
  func.func @transform_2(%arg0: i32) -> (i32, i32) {
    %c0_i32 = arith.constant 0 : i32
    %c0_i32_0 = arith.constant 0 : i32
    %c0_i32_1 = arith.constant 0 : i32
    return %c0_i32, %c0_i32_0 : i32, i32
  }
  func.func @transform_3(%arg0: i32) -> (i32, i32) {
    %c0_i32 = arith.constant 0 : i32
    %c0_i32_0 = arith.constant 0 : i32
    %c0_i32_1 = arith.constant 0 : i32
    return %c0_i32, %c0_i32_0 : i32, i32
  }
  func.func @transform_4(%arg0: i32) -> (i32, i32) {
    %c0_i32 = arith.constant 0 : i32
    %c0_i32_0 = arith.constant 0 : i32
    %c0_i32_1 = arith.constant 0 : i32
    return %c0_i32, %c0_i32_0 : i32, i32
  }
  func.func @transform_5(%arg0: i32) -> (i32, i32) {
    %c0_i32 = arith.constant 0 : i32
    %c0_i32_0 = arith.constant 0 : i32
    %c0_i32_1 = arith.constant 0 : i32
    return %c0_i32, %c0_i32_0 : i32, i32
  }
  func.func @transform_6(%arg0: i32) -> (i32, i32) {
    %c0_i32 = arith.constant 0 : i32
    %c0_i32_0 = arith.constant 0 : i32
    %c0_i32_1 = arith.constant 0 : i32
    return %c0_i32, %c0_i32_0 : i32, i32
  }
  func.func @transform_7(%arg0: i32) -> (i32, i32) {
    %c0_i32 = arith.constant 0 : i32
    %c0_i32_0 = arith.constant 0 : i32
    %c0_i32_1 = arith.constant 0 : i32
    return %c0_i32, %c0_i32_0 : i32, i32
  }
  func.func @transform_8(%arg0: i32) -> i32 {
    %c0_i32 = arith.constant 0 : i32
    %c0_i32_0 = arith.constant 0 : i32
    return %c0_i32 : i32
  }
  func.func @transform_9(%arg0: i32) -> (i32, i32) {
    %c0_i32 = arith.constant 0 : i32
    %c0_i32_0 = arith.constant 0 : i32
    return %c0_i32, %arg0 : i32, i32
  }
}

</mosaic_0001>

<bundles_post_ra>
// kernel: tpu_custom_call.1
= control target key start
LH: loop header
LB: loop body
LE: loop exit
PB: predicated region body
PF: predicated region fallthrough
CT: control target
= control target key end

     0   :  { %s1295_s0 = inlined_call_operand.vmem [shape: bf16[32,512], index: 0, kind: input, shape index: {}]   ;;  %s1296_s1 = inlined_call_operand.vmem [shape: bf16[32,32], index: 1, kind: input, shape index: {}]   ;;  %s1297_s2 = inlined_call_operand.vmem [shape: f32[32,1], index: 2, kind: input, shape index: {}]   ;;  %s1298_s3 = inlined_call_operand.vmem [shape: bf16[32,32], index: 3, kind: input, shape index: {}]   ;;  %s1299_s4 = inlined_call_operand.vmem [shape: f32[32,1], index: 4, kind: input, shape index: {}]   ;;  %s1300_s5 = inlined_call_operand.vmem [shape: bf16[32,32], index: 5, kind: input, shape index: {}]   ;;  %s1301_s6 = inlined_call_operand.vmem [shape: f32[32,1], index: 6, kind: input, shape index: {}]   ;;  %s1302_s7 = inlined_call_operand.vmem [shape: f32[32,1], index: 7, kind: input, shape index: {}]   ;;  %s1303_s8 = inlined_call_operand.<no memory space> [shape: f32[1], index: 8, kind: input, shape index: {}]   ;;  %s1304_s9 = inlined_call_operand.hbm [shape: f32[1,512], index: 9, kind: output, shape index: {}]  }
   0x1   :  { %14 = sst [smem:[#allocation2]] %s1303_s8 }
   0x2   :  { %15 = vsyncpa [#allocation5], 0 }
   0x3   :  { %17 = vsyncpa [#allocation5 + $0x1], 0  ;;  %s1121_s11 = smov 0   ;;  %s1123_s12 = smov 0  }
   0x4   :  { %s1125_s13 = smov 0   ;;  %s1127_s14 = smov 0  }
   0x5 LB: > { %s879_s8 = sadd.s32 4294967295, %s1065_s14   ;;  %s880_s15 = sadd.s32 4294967294, %s1065_s14   ;;  %s1065_s14 = sphi %s1127_s14, %s1310_s14   ;;  %s1061_s13 = sphi %s1125_s13, %s1309_s13   ;;  %s1057_s12 = sphi %s1123_s12, %s1308_s12   ;;  %s1053_s11 = sphi %s1121_s11, %s1307_s11  }
   0x6   : > { %s1144_s16 = sadd.s32 1, %s1065_s14   ;;  %s30_s17 = sadd.s32 1, %s1061_s13 }
   0x7   : > { %s27_s18 = ssub.s32 %s1065_s14, %s1144_s16  ;;  %p37_p0 = scmp.ne.s32.totalorder %s1061_s13, %s1057_s12 }
   0x8   : > { %p28_p1 = scmp.eq.s32.totalorder %s27_s18, 0  ;;  %p38_p2 = scmp.eq.s32.totalorder %s1065_s14, 0 }
   0x9   : > { %p235_p3 = scmp.eq.s32.totalorder %s879_s8, 1  ;;  %p240_p4 = scmp.ne.s32.totalorder %s1057_s12, %s1053_s11 }
   0xa   : > { %s1157_s19 = scalar_select %p28_p1, %s1061_s13, %s30_s17  }
   0xb   : > { %p39_p5 = por %p38_p2, %p37_p0  ;;  %p1159_p6 = por %p235_p3, %p37_p0 }
   0xc   : > { %p241_p7 = scmp.eq.s32.totalorder %s880_s15, 1  ;;  %p882_p9 = scmp.ge.s32.totalorder %s1065_s14, 2 }
   0xe   : > { %p1163_p8 = por %p241_p7, %p240_p4  ;;  %281 = sbr.rel (%p882_p9) target bundleno = 27 (0x1b), region = 48 }
  0x13   : > { %284 = sbr.rel (!%p39_p5) target bundleno = 27 (0x1b), region = 52  ;;  %s286_s22 = sand.u32 (%p39_p5), 1, %s1061_s13  }
  0x14   : > { %s945_s23 = sshll.u32 (%p39_p5), %s1065_s14, 3  ;;  %s883_s24 = sshll.u32 (%p39_p5), %s286_s22, 5 }
  0x15   : > { %s291_s27 = scalar_lea.vmem (%p39_p5), %s1295_s0, %s945_s23  ;;  %s288_s28 = scalar_lea.vmem (%p39_p5), [#allocation3], %s883_s24 }
  0x16   : > { %v326_v0 = vld [vmem:[%s291_s27] sm:$0xff] (%p39_p5)  ;;  %v328_v1 = vld [vmem:[%s291_s27 + $0x10] sm:$0xff] (%p39_p5) }
  0x17   : > { %v330_v2 = vld [vmem:[%s291_s27 + $0x20] sm:$0xff] (%p39_p5)  ;;  %327 = vst [vmem:[%s288_s28] sm:$0xff] (%p39_p5), %v326_v0  ;;  %v332_v3 = vld [vmem:[%s291_s27 + $0x30] sm:$0xff] (%p39_p5) }
  0x18   : > { %329 = vst [vmem:[%s288_s28 + $0x8] sm:$0xff] %v328_v1 }
  0x19   : > { %331 = vst [vmem:[%s288_s28 + $0x10] sm:$0xff] %v330_v2 }
  0x1a   : > { %333 = vst [vmem:[%s288_s28 + $0x18] sm:$0xff] %v332_v3 }
  0x1b PF: > { %p886_p10 = scmp.ge.s32.totalorder %s1065_s14, 1  ;;  %p338_p11 = scmp.lt.s32.totalorder %s1065_s14, 3 }
  0x1d   : > { %p339_p12 = pnand %p886_p10, %p338_p11 }
  0x1e   : > { %s1184_s17 = sand.u32 (!%p339_p12), 1, %s1057_s12   ;;  %s784_s27 = sld [smem:[#allocation2]] (!%p339_p12) }
  0x1f   : > { %342 = sbr.rel (%p339_p12) target bundleno = 551 (0x227), region = 90  ;;  %s887_s18 = sshll.u32 (!%p339_p12), %s1184_s17, 5 }
  0x20   : > { %s347_s22 = scalar_lea.vmem (!%p339_p12), [#allocation3], %s887_s18  ;;  %s888_s28 = sshll.u32 (!%p339_p12), %s1184_s17, 1 }
  0x21   : > { %s942_s29 = sshll.u32 (!%p339_p12), %s879_s8, 1  ;;  %s379_s18 = scalar_lea.vmem (!%p339_p12), [#allocation4], %s888_s28 }
  0x22   : > { %s810_s15 = scalar_lea.hbm (!%p339_p12), %s1304_s9, %s942_s29  ;;  %s800_s8 = scalar_lea.sflag (!%p339_p12), [#allocation5], %s1184_s17 }
  0x23   : > { %s814_s23 = sshll.u32 (!%p339_p12), %s810_s15, 4  ;;  %s1023_s28 = scalar_lea.hbm (!%p339_p12), %s1304_s9, 4  ;;  %s815_s23 = int_to_ptr.hbm [resolvable:$true] %s814_s23 }
  0x24   : > { %v393_v4 = vld [vmem:[%s1297_s2 + $0x10] sm:$0xff]  ;;  %v391_v5 = vld [vmem:[%s1297_s2] sm:$0xff]  ;;  %v1067_v6 = vmov 0   ;;  %v951_v8 = vld [vmem:[%s347_s22 + $0x14] sm:$0xf0]  ;;  %vm445_vm0 = vcmask 261120  }
  0x25   : > { %1001 = vset.pattern.permute.xlu1 %v1067_v6  ;;  %1000 = vset.pattern.permute.xlu0 %v1067_v6  ;;  %v907_v7 = vld [vmem:[%s347_s22 + $0x10] sm:$0xf]  ;;  %v950_v9 = vld [vmem:[%s347_s22 + $0x14] sm:$0xf]  ;;  %v909_v11 = vld [vmem:[%s347_s22 + $0x18] sm:$0xf0] }
  0x26   : > { %407 = vperm.xlu0 %1000, %v393_v4   ;;  %397 = vperm.xlu1 %1001, %v391_v5   ;;  %v908_v10 = vor.u32 %v951_v8, %v907_v7  ;;  %v899_v12 = vld [vmem:[%s347_s22] sm:$0xf]  ;;  %v949_v13 = vld [vmem:[%s347_s22 + $0x4] sm:$0xf0]  ;;  %v912_v14 = vor.u32 %v950_v9, %v909_v11  ;;  %v948_v15 = vld [vmem:[%s347_s22 + $0x4] sm:$0xf] }
  0x27   : > { %1002 = vset.pattern.permute.xlu2 %v1067_v6  ;;  %v901_v16 = vld [vmem:[%s347_s22 + $0x8] sm:$0xf0]  ;;  %v394_v17 = vld [vmem:[%s1297_s2 + $0x18] sm:$0xff]  ;;  %v900_v19 = vor.u32 %v949_v13, %v899_v12  ;;  %v946_v21 = vld [vmem:[%s1296_s1] sm:$0xff]  ;;  %s812_s22 = sshll.u32 %s379_s18, 4  ;;  %s1017_s24 = sshra.s32 %s815_s23, 4  ;;  %s813_s22 = int_to_ptr.vmem [resolvable:$true] %s812_s22  ;;  %s1018_s24 = int_to_ptr.hbm [resolvable:$true] %s1017_s24 }
  0x28   : > { %458 = vmatpush.bf16.msra.mxu0 %v908_v10  ;;  %956 = vmatpush.bf16.msra.mxu2 %v908_v10  ;;  %v392_v18 = vld [vmem:[%s1297_s2 + $0x8] sm:$0xff]  ;;  %v904_v20 = vor.u32 %v948_v15, %v901_v16  ;;  %v522_v23 = vld [vmem:[%s1299_s4] sm:$0xff]  ;;  %v634_v26 = vld [vmem:[%s1301_s6 + $0x10] sm:$0xff]  ;;  %s1019_s25 = scalar_lea.hbm %s1018_s24, 2  ;;  %p1024_p2 = scmp.lt.s32.totalorder %s1018_s24, %s1304_s9 }
  0x29   : > { %477 = vmatpush.bf16.msra.mxu1 %v912_v14  ;;  %958 = vmatpush.bf16.msra.mxu3 %v912_v14  ;;  %v947_v22 = vld [vmem:[%s1296_s1 + $0x8] sm:$0xff]  ;;  %v734_v27 = vld [vmem:[%s1302_s7] sm:$0xff]  ;;  %v737_v29 = vld [vmem:[%s1302_s7 + $0x18] sm:$0xff]  ;;  %p1020_p13 = scmp.ne.s32.totalorder %s1018_s24, %s1019_s25  ;;  %p1025_p3 = scmp.lt.s32.totalorder %s1023_s28, %s1019_s25 }
  0x2a   : > { %v523_v24 = vld [vmem:[%s1299_s4 + $0x8] sm:$0xff]  ;;  %v524_v47 = vld [vmem:[%s1299_s4 + $0x10] sm:$0xff]  ;;  %v525_v0 = vld [vmem:[%s1299_s4 + $0x18] sm:$0xff] }
  0x2b   : > { %v633_v25 = vld [vmem:[%s1301_s6 + $0x8] sm:$0xff]  ;;  %538 = vperm.xlu2 %1002, %v524_v47   ;;  %v952_v8 = vld [vmem:[%s1298_s3] sm:$0xff]  ;;  %v635_v10 = vld [vmem:[%s1301_s6 + $0x18] sm:$0xff]  ;;  %p1021_p0 = pnand %p1020_p13, %p1159_p6  ;;  %p1026_p4 = por %p1025_p3, %p1024_p2 }
  0x2c   : > { %459 = vmatpush.bf16.msra.mxu0 %v900_v19  ;;  %957 = vmatpush.bf16.msra.mxu2 %v900_v19  ;;  %v735_v28 = vld [vmem:[%s1302_s7 + $0x8] sm:$0xff]  ;;  %v632_v9 = vld [vmem:[%s1301_s6] sm:$0xff]  ;;  %v736_v12 = vld [vmem:[%s1302_s7 + $0x10] sm:$0xff] }
  0x2d   : > { %478 = vmatpush.bf16.msra.mxu1 %v904_v20  ;;  %959 = vmatpush.bf16.msra.mxu3 %v904_v20  ;;  %v953_v11 = vld [vmem:[%s1298_s3 + $0x8] sm:$0xff]  ;;  %p1022_p1 = pneg %p1021_p0 }
  0x2e   : > { %412 = vperm.xlu0 %1000, %v394_v17   ;;  %402 = vperm.xlu1 %1001, %v392_v18  }
  0x2f   : > { %913 = vmatmul.msk.bf16.vlgmr.msra.gmra.mxu0 %vm445_vm0, %v946_v21  ;;  %914 = vmatmul.msk.bf16.vlgmr.msra.gmra.mxu2 %vm445_vm0, %v947_v22  ;;  %p1027_p5 = pnand %p1026_p4, %p1022_p1 }
  0x30   : > { %915 = vmatmul.msk.bf16.vlgmr.msra.gmra.mxu1 %vm445_vm0, %v946_v21  ;;  %916 = vmatmul.msk.bf16.vlgmr.msra.gmra.mxu3 %vm445_vm0, %v947_v22 }
  0x33   : > { %543 = vperm.xlu2 %1002, %v525_v0  }
  0x36   : > { %528 = vperm.xlu0 %1000, %v522_v23   ;;  %533 = vperm.xlu1 %1001, %v523_v24  }
  0x3b   : > { %638 = vperm.xlu2 %1002, %v632_v9  }
  0x3e   : > { %643 = vperm.xlu0 %1000, %v633_v25   ;;  %648 = vperm.xlu1 %1001, %v634_v26  }
  0x43   : > { %653 = vperm.xlu2 %1002, %v635_v10  }
  0x46   : > { %740 = vperm.xlu0 %1000, %v734_v27   ;;  %745 = vperm.xlu1 %1001, %v735_v28  }
  0x4b   : > { %750 = vperm.xlu2 %1002, %v736_v12  }
  0x4e   : > { %755 = vperm.xlu0 %1000, %v737_v29  }
  0x85   : > { %v539_v17 = vpop.permute.xlu2 %538 }
  0x8d   : > { %v544_v26 = vpop.permute.xlu2 %543 }
  0x98   : > { %v398_v32 = vpop.permute.xlu1 %397  ;;  %v408_v33 = vpop.permute.xlu0 %407 }
  0xa0   : > { %v403_v40 = vpop.permute.xlu1 %402  ;;  %v413_v44 = vpop.permute.xlu0 %412 }
  0xa8   : > { %v529_v20 = vpop.permute.xlu0 %528  ;;  %v534_v22 = vpop.permute.xlu1 %533 }
  0xac   : > { %v461_v30 = vpop.f32.mrf.mxu0 }
  0xad   : > { %v480_v31 = vpop.f32.mrf.mxu1  ;;  %v462_v37 = vadd.f32 %v461_v30, %v398_v32 }
  0xae   : > { %v481_v41 = vadd.f32 %v480_v31, %v398_v32 }
  0xaf   : > { %v498_v48 = vmul.f32 0.01, %v462_v37  ;;  %vm490_vm1 = vcmp.gt.f32.partialorder %v462_v37, 0.0 }
  0xb0   : > { %v499_v52 = vmul.f32 0.01, %v481_v41  ;;  %vm491_vm7 = vcmp.gt.f32.partialorder %v481_v41, 0.0 }
  0xb1   : > { %v506_v2 = vsel %vm490_vm1, %v462_v37, %v498_v48 }
  0xb2   : > { %v466_v34 = vpop.f32.mrf.mxu2  ;;  %v507_v4 = vsel %vm491_vm7, %v481_v41, %v499_v52 }
  0xb3   : > { %v485_v35 = vpop.f32.mrf.mxu3  ;;  %v467_v38 = vadd.f32 %v466_v34, %v408_v33 }
  0xb4   : > { %v463_v36 = vpop.f32.mrf.mxu0  ;;  %v486_v42 = vadd.f32 %v485_v35, %v408_v33 }
  0xb5   : > { %v482_v39 = vpop.f32.mrf.mxu1  ;;  %v464_v43 = vadd.f32 %v463_v36, %v403_v40  ;;  %v502_v49 = vmul.f32 0.01, %v467_v38  ;;  %vm494_vm2 = vcmp.gt.f32.partialorder %v467_v38, 0.0 }
  0xb6   : > { %v483_v45 = vadd.f32 %v482_v39, %v403_v40  ;;  %v503_v53 = vmul.f32 0.01, %v486_v42  ;;  %vm495_vm4 = vcmp.gt.f32.partialorder %v486_v42, 0.0 }
  0xb7   : > { %v500_v55 = vmul.f32 0.01, %v464_v43  ;;  %vm492_vm6 = vcmp.gt.f32.partialorder %v464_v43, 0.0  ;;  %v510_v59 = vsel %vm494_vm2, %v467_v38, %v502_v49 }
  0xb8   : > { %v501_v57 = vmul.f32 0.01, %v483_v45  ;;  %vm493_vm8 = vcmp.gt.f32.partialorder %v483_v45, 0.0  ;;  %v511_v62 = vsel %vm495_vm4, %v486_v42, %v503_v53  ;;  %v954_v53 = vld [vmem:[%s1300_s5] sm:$0xff] }
  0xb9   : > { %v508_v3 = vsel %vm492_vm6, %v464_v43, %v500_v55 }
  0xba   : > { %v468_v46 = vpop.f32.mrf.mxu2  ;;  %v509_v5 = vsel %vm493_vm8, %v483_v45, %v501_v57  ;;  %v518_v6 = vpack.c.bf16 %v508_v3, %v506_v2  ;;  %v639_v57 = vpop.permute.xlu2 %638 }
  0xbb   : > { %v469_v50 = vadd.f32 %v468_v46, %v413_v44  ;;  %v487_v51 = vpop.f32.mrf.mxu3  ;;  %v519_v7 = vpack.c.bf16 %v509_v5, %v507_v4 }
  0xbc   : > { %v488_v54 = vadd.f32 %v487_v51, %v413_v44 }
  0xbd   : > { %v504_v56 = vmul.f32 0.01, %v469_v50  ;;  %vm496_vm3 = vcmp.gt.f32.partialorder %v469_v50, 0.0 }
  0xbe   : > { %v505_v58 = vmul.f32 0.01, %v488_v54  ;;  %vm497_vm5 = vcmp.gt.f32.partialorder %v488_v54, 0.0 }
  0xbf   : > { %v512_v60 = vsel %vm496_vm3, %v469_v50, %v504_v56 }
  0xc0   : > { %v520_v61 = vpack.c.bf16 %v512_v60, %v510_v59  ;;  %v513_v63 = vsel %vm497_vm5, %v488_v54, %v505_v58  ;;  %v955_v54 = vld [vmem:[%s1300_s5 + $0x8] sm:$0xff]  ;;  %v644_v59 = vpop.permute.xlu0 %643 }
  0xc1   : > { %v521_v1 = vpack.c.bf16 %v513_v63, %v511_v62 }
  0xc2   : > { %568 = vmatpush.bf16.msrb.mxu2 %v520_v61  ;;  %v649_v61 = vpop.permute.xlu1 %648  ;;  %v654_v0 = vpop.permute.xlu2 %653 }
  0xc3   : > { %587 = vmatpush.bf16.msrb.mxu3 %v521_v1 }
  0xc6   : > { %569 = vmatpush.bf16.msrb.mxu2 %v518_v6 }
  0xc7   : > { %588 = vmatpush.bf16.msrb.mxu3 %v519_v7 }
  0xc8   : > { %v741_v9 = vpop.permute.xlu0 %740 }
  0xc9   : > { %925 = vmatmul.msk.bf16.vlgmr.msrb.gmra.mxu2 %vm445_vm0, %v952_v8 }
  0xca   : > { %927 = vmatmul.msk.bf16.vlgmr.msrb.gmra.mxu3 %vm445_vm0, %v952_v8 }
  0xd9   : > { %926 = vmatmul.msk.bf16.gmra.mxu2 %vm445_vm0, %v953_v11 }
  0xda   : > { %928 = vmatmul.msk.bf16.gmra.mxu3 %vm445_vm0, %v953_v11 }
 0x14c   : > { %v571_v13 = vpop.f32.mrf.mxu2 }
 0x14d   : > { %v590_v14 = vpop.f32.mrf.mxu3  ;;  %v572_v23 = vadd.f32 %v571_v13, %v529_v20 }
 0x14e   : > { %v591_v29 = vadd.f32 %v590_v14, %v529_v20 }
 0x14f   : > { %v608_v33 = vmul.f32 0.01, %v572_v23  ;;  %vm600_vm14 = vcmp.gt.f32.partialorder %v572_v23, 0.0 }
 0x150   : > { %v609_v42 = vmul.f32 0.01, %v591_v29  ;;  %vm601_vm1 = vcmp.gt.f32.partialorder %v591_v29, 0.0 }
 0x151   : > { %v616_v49 = vsel %vm600_vm14, %v572_v23, %v608_v33  ;;  %v751_v23 = vpop.permute.xlu2 %750 }
 0x152   : > { %v617_v51 = vsel %vm601_vm1, %v591_v29, %v609_v42 }
 0x154   : > { %v573_v15 = vpop.f32.mrf.mxu2 }
 0x155   : > { %v592_v16 = vpop.f32.mrf.mxu3  ;;  %v574_v25 = vadd.f32 %v573_v15, %v534_v22 }
 0x156   : > { %v593_v27 = vadd.f32 %v592_v16, %v534_v22  ;;  %v746_v16 = vpop.permute.xlu1 %745 }
 0x157   : > { %v610_v36 = vmul.f32 0.01, %v574_v25  ;;  %vm602_vm13 = vcmp.gt.f32.partialorder %v574_v25, 0.0 }
 0x158   : > { %v611_v38 = vmul.f32 0.01, %v593_v27  ;;  %vm603_vm15 = vcmp.gt.f32.partialorder %v593_v27, 0.0 }
 0x159   : > { %v618_v47 = vsel %vm602_vm13, %v574_v25, %v610_v36 }
 0x15a   : > { %v619_v48 = vsel %vm603_vm15, %v593_v27, %v611_v38  ;;  %v628_v50 = vpack.c.bf16 %v618_v47, %v616_v49 }
 0x15b   : > { %v629_v52 = vpack.c.bf16 %v619_v48, %v617_v51 }
 0x15c   : > { %v576_v18 = vpop.f32.mrf.mxu2 }
 0x15d   : > { %v595_v19 = vpop.f32.mrf.mxu3  ;;  %v577_v21 = vadd.f32 %v576_v18, %v539_v17 }
 0x15e   : > { %v596_v24 = vadd.f32 %v595_v19, %v539_v17 }
 0x15f   : > { %v612_v30 = vmul.f32 0.01, %v577_v21  ;;  %vm604_vm9 = vcmp.gt.f32.partialorder %v577_v21, 0.0 }
 0x160   : > { %v613_v34 = vmul.f32 0.01, %v596_v24  ;;  %vm605_vm11 = vcmp.gt.f32.partialorder %v596_v24, 0.0 }
 0x161   : > { %v620_v40 = vsel %vm604_vm9, %v577_v21, %v612_v30  ;;  %vm791_vm9 = vcmask 1040384  }
 0x162   : > { %v621_v44 = vsel %vm605_vm11, %v596_v24, %v613_v34 }
 0x164   : > { %v578_v28 = vpop.f32.mrf.mxu2 }
 0x165   : > { %v579_v31 = vadd.f32 %v578_v28, %v544_v26  ;;  %v597_v32 = vpop.f32.mrf.mxu3 }
 0x166   : > { %v598_v35 = vadd.f32 %v597_v32, %v544_v26 }
 0x167   : > { %v614_v37 = vmul.f32 0.01, %v579_v31  ;;  %vm606_vm10 = vcmp.gt.f32.partialorder %v579_v31, 0.0 }
 0x168   : > { %v615_v39 = vmul.f32 0.01, %v598_v35  ;;  %vm607_vm12 = vcmp.gt.f32.partialorder %v598_v35, 0.0 }
 0x169   : > { %v622_v41 = vsel %vm606_vm10, %v579_v31, %v614_v37 }
 0x16a   : > { %v630_v43 = vpack.c.bf16 %v622_v41, %v620_v40  ;;  %v623_v45 = vsel %vm607_vm12, %v598_v35, %v615_v39  ;;  %v756_v35 = vpop.permute.xlu0 %755 }
 0x16b   : > { %v631_v46 = vpack.c.bf16 %v623_v45, %v621_v44 }
 0x16c   : > { %678 = vmatpush.bf16.msrb.mxu0 %v630_v43 }
 0x16d   : > { %697 = vmatpush.bf16.msrb.mxu1 %v631_v46 }
 0x170   : > { %679 = vmatpush.bf16.msrb.mxu0 %v628_v50 }
 0x171   : > { %698 = vmatpush.bf16.msrb.mxu1 %v629_v52 }
 0x173   : > { %937 = vmatmul.msk.bf16.vlgmr.msrb.gmra.mxu0 %vm445_vm0, %v954_v53 }
 0x174   : > { %939 = vmatmul.msk.bf16.vlgmr.msrb.gmra.mxu1 %vm445_vm0, %v954_v53 }
 0x183   : > { %938 = vmatmul.msk.bf16.gmra.mxu0 %vm445_vm0, %v955_v54 }
 0x184   : > { %940 = vmatmul.msk.bf16.gmra.mxu1 %vm445_vm0, %v955_v54 }
 0x1f0   : > { %v681_v55 = vpop.f32.mrf.mxu0 }
 0x1f1   : > { %v700_v56 = vpop.f32.mrf.mxu1  ;;  %v682_v1 = vadd.f32 %v681_v55, %v639_v57  ;;  %v785_v55 = vstv %s784_s27 }
 0x1f2   : > { %v701_v2 = vadd.f32 %v700_v56, %v639_v57 }
 0x1f3   : > { %v718_v10 = vmul.f32 0.01, %v682_v1  ;;  %vm710_vm3 = vcmp.gt.f32.partialorder %v682_v1, 0.0 }
 0x1f4   : > { %v719_v12 = vmul.f32 0.01, %v701_v2  ;;  %vm711_vm5 = vcmp.gt.f32.partialorder %v701_v2, 0.0 }
 0x1f5   : > { %v726_v17 = vsel %vm710_vm3, %v682_v1, %v718_v10 }
 0x1f6   : > { %v727_v19 = vsel %vm711_vm5, %v701_v2, %v719_v12  ;;  %v758_v27 = vmul.f32 %v741_v9, %v726_v17 }
 0x1f7   : > { %v759_v30 = vmul.f32 %v741_v9, %v727_v19 }
 0x1f8   : > { %v683_v58 = vpop.f32.mrf.mxu0 }
 0x1f9   : > { %v702_v60 = vpop.f32.mrf.mxu1  ;;  %v684_v62 = vadd.f32 %v683_v58, %v644_v59  ;;  %v794_v58 = vlaneseq }
 0x1fa   : > { %v703_v63 = vadd.f32 %v702_v60, %v644_v59 }
 0x1fb   : > { %v720_v4 = vmul.f32 0.01, %v684_v62  ;;  %vm712_vm2 = vcmp.gt.f32.partialorder %v684_v62, 0.0  ;;  %vm796_vm10 = vcmp.lt.s32.totalorder %v794_v58, 256 }
 0x1fc   : > { %v721_v7 = vmul.f32 0.01, %v703_v63  ;;  %vm713_vm0 = vcmp.gt.f32.partialorder %v703_v63, 0.0 }
 0x1fd   : > { %v728_v14 = vsel %vm712_vm2, %v684_v62, %v720_v4 }
 0x1fe   : > { %v729_v15 = vsel %vm713_vm0, %v703_v63, %v721_v7  ;;  %v760_v20 = vmul.f32 %v746_v16, %v728_v14 }
 0x1ff   : > { %v761_v24 = vmul.f32 %v746_v16, %v729_v15 }
 0x200   : > { %v686_v3 = vpop.f32.mrf.mxu0  ;;  %v766_v33 = vadd.f32 %v760_v20, %v758_v27 }
 0x201   : > { %v687_v5 = vadd.f32 %v686_v3, %v649_v61  ;;  %v705_v6 = vpop.f32.mrf.mxu1  ;;  %v775_v36 = vadd.f32 %v761_v24, %v759_v30 }
 0x202   : > { %v706_v8 = vadd.f32 %v705_v6, %v649_v61 }
 0x203   : > { %v722_v11 = vmul.f32 0.01, %v687_v5  ;;  %vm714_vm4 = vcmp.gt.f32.partialorder %v687_v5, 0.0 }
 0x204   : > { %v723_v13 = vmul.f32 0.01, %v706_v8  ;;  %vm715_vm6 = vcmp.gt.f32.partialorder %v706_v8, 0.0 }
 0x205   : > { %v730_v18 = vsel %vm714_vm4, %v687_v5, %v722_v11 }
 0x206   : > { %v731_v21 = vsel %vm715_vm6, %v706_v8, %v723_v13  ;;  %v762_v28 = vmul.f32 %v751_v23, %v730_v18 }
 0x207   : > { %v763_v31 = vmul.f32 %v751_v23, %v731_v21 }
 0x208   : > { %v688_v22 = vpop.f32.mrf.mxu0  ;;  %v767_v38 = vadd.f32 %v766_v33, %v762_v28 }
 0x209   : > { %v689_v25 = vadd.f32 %v688_v22, %v654_v0  ;;  %v707_v26 = vpop.f32.mrf.mxu1  ;;  %v776_v41 = vadd.f32 %v775_v36, %v763_v31 }
 0x20a   : > { %v708_v29 = vadd.f32 %v707_v26, %v654_v0 }
 0x20b   : > { %vm716_vm7 = vcmp.gt.f32.partialorder %v689_v25, 0.0  ;;  %v724_v32 = vmul.f32 0.01, %v689_v25 }
 0x20c   : > { %vm717_vm8 = vcmp.gt.f32.partialorder %v708_v29, 0.0  ;;  %v725_v34 = vmul.f32 0.01, %v708_v29 }
 0x20d   : > { %v732_v37 = vsel %vm716_vm7, %v689_v25, %v724_v32 }
 0x20e   : > { %v764_v39 = vmul.f32 %v756_v35, %v732_v37  ;;  %v733_v40 = vsel %vm717_vm8, %v708_v29, %v725_v34 }
 0x20f   : > { %v765_v42 = vmul.f32 %v756_v35, %v733_v40 }
 0x210   : > { %v768_v43 = vadd.f32 %v767_v38, %v764_v39 }
 0x211   : > { %v777_v44 = vadd.f32 %v776_v41, %v765_v42 }
 0x212   : > { %v769_v45 = vrot.slane %v768_v43, 4 }
 0x213   : > { %v778_v46 = vrot.slane %v777_v44, 4 }
 0x214   : > { %v770_v47 = vadd.f32 %v769_v45, %v768_v43 }
 0x215   : > { %v779_v48 = vadd.f32 %v778_v46, %v777_v44 }
 0x216   : > { %v771_v49 = vrot.slane %v770_v47, 2 }
 0x217   : > { %v780_v50 = vrot.slane %v779_v48, 2 }
 0x218   : > { %v772_v51 = vadd.f32 %v771_v49, %v770_v47 }
 0x219   : > { %v781_v52 = vadd.f32 %v780_v50, %v779_v48 }
 0x21a   : > { %v773_v53 = vrot.slane %v772_v51, 1 }
 0x21b   : > { %v782_v54 = vrot.slane %v781_v52, 1 }
 0x21c   : > { %v774_v56 = vadd.f32 %v773_v53, %v772_v51 }
 0x21d   : > { %v783_v57 = vadd.f32 %v782_v54, %v781_v52 }
 0x21e   : > { %v786_v60 = vadd.f32 %v785_v55, %v774_v56 }
 0x21f   : > { %v787_v59 = vadd.f32 %v785_v55, %v783_v57 }
 0x221   : > { %v790_v61 = vrot.slane %v787_v59, 7 }
 0x223   : > { %v792_v62 = vsel %vm791_vm9, %v786_v60, %v790_v61 }
 0x224   : > { %798 = vst.msk [vmem:[%s379_s18] sm:$0x3] %vm796_vm10, %v792_v62 }
 0x225   : > { %1030 = shalt.err (!%p1027_p5)
}
 0x226   : > { %960 = dma.vmem_to_hbm [thread:$0]  (%p1159_p6), %s813_s22, 32, %s815_s23, %s800_s8  }
 0x227 PF: > { %s826_s17 = sand.u32 1, %s1053_s11   ;;  %p963_p7 = pnand %p882_p9, %p1163_p8 }
 0x228   : > { %s827_s10 = scalar_lea.sflag [#allocation5], %s826_s17 }
 0x229   : > { %p964_p10 = pneg %p963_p7 }
 0x22b   : > { %1048 = dma.done.wait (%p964_p10), %s827_s10, 32  }
 0x22c   : > { %1050 = vsyncadd (%p964_p10), %s827_s10, 4294967264  ;;  %p20_p11 = scmp.ge.s32.totalorder %s1144_s16, 4   ;;  %s1307_s11 = smov %s1057_s12 }
 0x22d   : > { %s1308_s12 = smov %s1061_s13  ;;  %s1309_s13 = smov %s1157_s19 }
 0x22e   : > { %s1310_s14 = smov %s1144_s16  ;;  %22 = sbr.rel (!%p20_p11) target bundleno = 5 (0x5), region = 134 }
 0x233   :  { %833 = vsyncpa [#allocation5], 1 }
 0x234   :  { %835 = vsyncpa [#allocation5 + $0x1], 1 }

</bundles_post_ra>
